<compile_context>
chip_gen: v6e
topology: v6e:2x2x1
jax: 0.10.0
libtpu: 0.0.40
codegen_flags: <defaults>
</compile_context>

<pallas_src>
import functools

import jax
import jax.numpy as jnp
from jax.experimental import pallas as pl
from jax.experimental.pallas import tpu as pltpu

LANE = 128
SUBLANE = 8


def _round_up(x, m):
    return (x + m - 1) // m * m


# ----------------------------------------------------------------------------
# Fused kernel: h1 = relu(x@W1+b1); h2 = relu(h1@W2+b2); out = h2@W3+b3
# Weights are pre-transposed to (in_features, out_features); biases are
# (1, out) f32.  Matmuls accumulate in f32 on the MXU; ReLU runs on the VPU.
# ----------------------------------------------------------------------------
def _mlp_kernel(x_ref, w1_ref, b1_ref, w2_ref, b2_ref, w3_ref, b3_ref, o_ref):
    cdt = x_ref.dtype
    x = x_ref[...]
    h1 = jnp.dot(x, w1_ref[...], preferred_element_type=jnp.float32) + b1_ref[...]
    h1 = jnp.maximum(h1, 0.0).astype(cdt)        # ReLU (Dropout(p=0) = identity)
    h2 = jnp.dot(h1, w2_ref[...], preferred_element_type=jnp.float32) + b2_ref[...]
    h2 = jnp.maximum(h2, 0.0).astype(cdt)        # ReLU
    out = jnp.dot(h2, w3_ref[...], preferred_element_type=jnp.float32) + b3_ref[...]
    o_ref[...] = out.astype(o_ref.dtype)


def _cost_estimate(B, F, H0, H1, Cp, itemsize):
    flops = 2 * B * (F * H0 + H0 * H1 + H1 * Cp)
    bytes_accessed = (
        itemsize * (B * F + F * H0 + H0 * H1 + H1 * Cp)   # x + bf16 weights
        + 4 * (H0 + H1 + Cp)                               # f32 biases
        + 4 * B * Cp)                                      # f32 output
    return pl.CostEstimate(flops=flops, transcendentals=0,
                           bytes_accessed=bytes_accessed)


def _vmem_limit_bytes(bt, F, H0, H1, Cp, itemsize):
    # Single-buffered weights/biases + double-buffered x/out + f32 intermediates.
    weights = itemsize * (F * H0 + H0 * H1 + H1 * Cp) + 4 * (H0 + H1 + Cp)
    io = 2 * bt * F * itemsize + 2 * bt * Cp * 4
    interm = 4 * bt * (H0 + H1 + Cp)
    est = weights + io + interm
    return int(min(100 * (1 << 20), max(32 * (1 << 20), est + (8 << 20))))


def mlp_forward(x, params, *, batch_tile=256, compute_dtype=jnp.bfloat16):
    """x: (B, F).  params: pre-transposed (in, out) weights, (1, out) biases."""
    x = x.astype(jnp.float32)                    # module does x.to(float32)
    B, F = x.shape
    w1, b1 = params["w1"], params["b1"]
    w2, b2 = params["w2"], params["b2"]
    w3, b3 = params["w3"], params["b3"]
    H0, H1, C = w1.shape[1], w2.shape[1], w3.shape[1]

    # bf16 inputs/weights; f32 biases and f32 accumulation inside the kernel.
    xc = x.astype(compute_dtype)
    w1c, w2c, w3c = (w.astype(compute_dtype) for w in (w1, w2, w3))
    b1f, b2f, b3f = (b.astype(jnp.float32) for b in (b1, b2, b3))

    # Lane-dense output: pad class dim to a multiple of 128 with zero columns.
    Cp = _round_up(C, LANE)
    if Cp != C:
        w3c = jnp.pad(w3c, ((0, 0), (0, Cp - C)))
        b3f = jnp.pad(b3f, ((0, 0), (0, Cp - C)))

    itemsize = jnp.dtype(compute_dtype).itemsize

    if B > batch_tile:
        # Pipelined, TC-shardable path: pad batch to a multiple of batch_tile.
        Bp = _round_up(B, batch_tile)
        if Bp != B:
            xc = jnp.pad(xc, ((0, Bp - B), (0, 0)))
        grid = (Bp // batch_tile,)
        const = lambda i: (0, 0)
        # Block-constant weights/biases: single-buffered (no pointless 2x VMEM).
        wspec = functools.partial(pl.BlockSpec, index_map=const,
                                  pipeline_mode=pl.Buffered(1))
        out = pl.pallas_call(
            _mlp_kernel,
            out_shape=jax.ShapeDtypeStruct((Bp, Cp), jnp.float32),
            grid=grid,
            in_specs=[
                pl.BlockSpec((batch_tile, F), lambda i: (i, 0)),
                wspec((F, H0)), wspec((1, H0)),
                wspec((H0, H1)), wspec((1, H1)),
                wspec((H1, Cp)), wspec((1, Cp)),
            ],
            out_specs=pl.BlockSpec((batch_tile, Cp), lambda i: (i, 0)),
            compiler_params=pltpu.CompilerParams(
                dimension_semantics=("parallel",),
                vmem_limit_bytes=_vmem_limit_bytes(
                    batch_tile, F, H0, H1, Cp, itemsize)),
            cost_estimate=_cost_estimate(Bp, F, H0, H1, Cp, itemsize),
        )(xc, w1c, b1f, w2c, b2f, w3c, b3f)
        return out[:B, :C]

    # Small-batch path: single fused launch, all operands resident in VMEM.
    Bp = _round_up(B, SUBLANE)
    if Bp != B:
        xc = jnp.pad(xc, ((0, Bp - B), (0, 0)))
    out = pl.pallas_call(
        _mlp_kernel,
        out_shape=jax.ShapeDtypeStruct((Bp, Cp), jnp.float32),
        compiler_params=pltpu.CompilerParams(
            vmem_limit_bytes=_vmem_limit_bytes(Bp, F, H0, H1, Cp, itemsize)),
        cost_estimate=_cost_estimate(Bp, F, H0, H1, Cp, itemsize),
    )(xc, w1c, b1f, w2c, b2f, w3c, b3f)
    return out[:B, :C]


mlp_forward_jit = jax.jit(mlp_forward,
                          static_argnames=("batch_tile", "compute_dtype"))

# TODO(synk): BatchNorm1d branches (bn_en / bn_de) are skipped because the
# module default do_bn=False disables them in forward; Dropout(p=0) is the
# identity.  K-tiling of the reduction dims (for hidden sizes whose weights
# exceed VMEM) is intentionally not implemented at these layer widths.


# ----------------------------------------------------------------------------
# Parameter init matching nn.Linear (uniform(-1/sqrt(fan_in), 1/sqrt(fan_in)))
# with weights stored pre-transposed as (in_features, out_features).
# ----------------------------------------------------------------------------
def init_params(key, features, hidden_size, class_num):
    h0, h1 = hidden_size
    params = {}

    def linear_init(key, fin, fout):
        k = 1.0 / jnp.sqrt(jnp.float32(fin))
        kw, kb = jax.random.split(key)
        w = jax.random.uniform(kw, (fin, fout), jnp.float32, -k, k)
        b = jax.random.uniform(kb, (1, fout), jnp.float32, -k, k)
        return w, b

    key, k1, k2, k3 = jax.random.split(key, 4)
    params["w1"], params["b1"] = linear_init(k1, features, h0)
    params["w2"], params["b2"] = linear_init(k2, h0, h1)
    params["w3"], params["b3"] = linear_init(k3, h1, class_num)
    return params


def mlp_reference(x, params):
    """Pure-JAX f32 reference for correctness check."""
    x = x.astype(jnp.float32)
    h1 = jnp.maximum(x @ params["w1"] + params["b1"], 0.0)
    h2 = jnp.maximum(h1 @ params["w2"] + params["b2"], 0.0)
    return h2 @ params["w3"] + params["b3"]


if __name__ == "__main__":
    # --- small-shape check (module-sized: batch=2, features=4, hidden=32) ---
    B, FEAT = 2, 4
    HIDDEN = (32, 32)
    CLASS_NUM = 5

    key = jax.random.PRNGKey(0)
    key, kx = jax.random.split(key)
    x = jax.random.normal(kx, (B, FEAT), dtype=jnp.float32)
    params = init_params(key, FEAT, HIDDEN, CLASS_NUM)

    out = jax.block_until_ready(mlp_forward_jit(x, params))
    assert out.shape == (B, CLASS_NUM), out.shape
    ref = mlp_reference(x, params)
    assert jnp.allclose(out, ref, atol=5e-2, rtol=5e-2), (
        float(jnp.max(jnp.abs(out - ref))))

    # --- batch-tiled (pipelined) path: non-divisible B exercises padding ---
    B2, F2, H2, C2 = 1000, 128, (256, 256), 16
    key, kx2 = jax.random.split(key)
    x2 = jax.random.normal(kx2, (B2, F2), dtype=jnp.float32)
    params2 = init_params(key, F2, H2, C2)
    out2 = jax.block_until_ready(mlp_forward_jit(x2, params2))
    assert out2.shape == (B2, C2), out2.shape
    ref2 = mlp_reference(x2, params2)
    rel_err = jnp.max(jnp.abs(out2 - ref2)) / (jnp.max(jnp.abs(ref2)) + 1e-6)
    assert rel_err < 5e-2, float(rel_err)

    print("KERNEL_OK")
</pallas_src>

<mosaic_0001>
module attributes {stable_mosaic.version = 11 : i64} {
  func.func @_mlp_kernel(%arg0: memref<8x4xbf16, #tpu.memory_space<vmem>>, %arg1: memref<4x32xbf16, #tpu.memory_space<vmem>>, %arg2: memref<1x32xf32, #tpu.memory_space<vmem>>, %arg3: memref<32x32xbf16, #tpu.memory_space<vmem>>, %arg4: memref<1x32xf32, #tpu.memory_space<vmem>>, %arg5: memref<32x128xbf16, #tpu.memory_space<vmem>>, %arg6: memref<1x128xf32, #tpu.memory_space<vmem>>, %arg7: memref<8x128xf32, #tpu.memory_space<vmem>>) attributes {dimension_semantics = [], scalar_prefetch = 0 : i64, scratch_operands = 0 : i64, tpu.core_type = #tpu.core_type<tc>} {
    %c0 = arith.constant 0 : index
    %c0_0 = arith.constant 0 : index
    %0 = vector.load %arg0[%c0, %c0_0] : memref<8x4xbf16, #tpu.memory_space<vmem>>, vector<8x4xbf16>
    %c0_1 = arith.constant 0 : index
    %c0_2 = arith.constant 0 : index
    %1 = vector.load %arg1[%c0_1, %c0_2] : memref<4x32xbf16, #tpu.memory_space<vmem>>, vector<4x32xbf16>
    %cst = arith.constant dense<0.000000e+00> : vector<8x32xf32>
    %2 = tpu.matmul %0, %1, %cst {dimension_numbers = #tpu.dot_dimension_numbers<[1], [0], [0], [1], [0, 0, 1, 1], [], []>} : vector<8x4xbf16>, vector<4x32xbf16>, vector<8x32xf32> -> vector<8x32xf32>
    %c0_3 = arith.constant 0 : index
    %c0_4 = arith.constant 0 : index
    %3 = vector.load %arg2[%c0_3, %c0_4] : memref<1x32xf32, #tpu.memory_space<vmem>>, vector<1x32xf32>
    %4 = vector.broadcast %3 : vector<1x32xf32> to vector<8x32xf32>
    %5 = arith.addf %2, %4 : vector<8x32xf32>
    %cst_5 = arith.constant 0.000000e+00 : f32
    %6 = vector.broadcast %cst_5 : f32 to vector<8x32xf32>
    %7 = arith.maximumf %5, %6 : vector<8x32xf32>
    %8 = arith.truncf %7 : vector<8x32xf32> to vector<8x32xbf16>
    %c0_6 = arith.constant 0 : index
    %c0_7 = arith.constant 0 : index
    %9 = vector.load %arg3[%c0_6, %c0_7] : memref<32x32xbf16, #tpu.memory_space<vmem>>, vector<32x32xbf16>
    %cst_8 = arith.constant dense<0.000000e+00> : vector<8x32xf32>
    %10 = tpu.matmul %8, %9, %cst_8 {dimension_numbers = #tpu.dot_dimension_numbers<[1], [0], [0], [1], [0, 0, 1, 1], [], []>} : vector<8x32xbf16>, vector<32x32xbf16>, vector<8x32xf32> -> vector<8x32xf32>
    %c0_9 = arith.constant 0 : index
    %c0_10 = arith.constant 0 : index
    %11 = vector.load %arg4[%c0_9, %c0_10] : memref<1x32xf32, #tpu.memory_space<vmem>>, vector<1x32xf32>
    %12 = vector.broadcast %11 : vector<1x32xf32> to vector<8x32xf32>
    %13 = arith.addf %10, %12 : vector<8x32xf32>
    %cst_11 = arith.constant 0.000000e+00 : f32
    %14 = vector.broadcast %cst_11 : f32 to vector<8x32xf32>
    %15 = arith.maximumf %13, %14 : vector<8x32xf32>
    %16 = arith.truncf %15 : vector<8x32xf32> to vector<8x32xbf16>
    %c0_12 = arith.constant 0 : index
    %c0_13 = arith.constant 0 : index
    %17 = vector.load %arg5[%c0_12, %c0_13] : memref<32x128xbf16, #tpu.memory_space<vmem>>, vector<32x128xbf16>
    %cst_14 = arith.constant dense<0.000000e+00> : vector<8x128xf32>
    %18 = tpu.matmul %16, %17, %cst_14 {dimension_numbers = #tpu.dot_dimension_numbers<[1], [0], [0], [1], [0, 0, 1, 1], [], []>} : vector<8x32xbf16>, vector<32x128xbf16>, vector<8x128xf32> -> vector<8x128xf32>
    %c0_15 = arith.constant 0 : index
    %c0_16 = arith.constant 0 : index
    %19 = vector.load %arg6[%c0_15, %c0_16] : memref<1x128xf32, #tpu.memory_space<vmem>>, vector<1x128xf32>
    %20 = vector.broadcast %19 : vector<1x128xf32> to vector<8x128xf32>
    %21 = arith.addf %18, %20 : vector<8x128xf32>
    %c0_17 = arith.constant 0 : index
    %c0_18 = arith.constant 0 : index
    %22 = vector.load %arg7[%c0_17, %c0_18] : memref<8x128xf32, #tpu.memory_space<vmem>>, vector<8x128xf32>
    tpu.vector_store %arg7[%c0_17, %c0_18], %21 {strides = array<i32>} : memref<8x128xf32, #tpu.memory_space<vmem>>, vector<8x128xf32>,
    return
  }
}

</mosaic_0001>

<bundles_post_ra>
// kernel: mlp_forward.1
= control target key start
LH: loop header
LB: loop body
LE: loop exit
PB: predicated region body
PF: predicated region fallthrough
CT: control target
= control target key end

     0   :  { %vm40_vm0 = vcmask 1041408   ;;  %v272_v0 = vmov 0.0   ;;  %vm273_vm1 = vmmov 0   ;;  %vm36_vm2 = vcmask 31744   ;;  %s344_s1 = inlined_call_operand.vmem [shape: bf16[4,32], index: 1, kind: input, shape index: {}]   ;;  %s345_s0 = inlined_call_operand.vmem [shape: bf16[8,4], index: 0, kind: input, shape index: {}]   ;;  %s346_s3 = inlined_call_operand.vmem [shape: bf16[32,32], index: 3, kind: input, shape index: {}]   ;;  %s347_s5 = inlined_call_operand.vmem [shape: bf16[32,128], index: 5, kind: input, shape index: {}]   ;;  %s348_s2 = inlined_call_operand.vmem [shape: f32[1,32], index: 2, kind: input, shape index: {}]   ;;  %s349_s4 = inlined_call_operand.vmem [shape: f32[1,32], index: 4, kind: input, shape index: {}]   ;;  %s350_s6 = inlined_call_operand.vmem [shape: f32[1,128], index: 6, kind: input, shape index: {}]   ;;  %s351_s7 = inlined_call_operand.vmem [shape: f32[8,128], index: 7, kind: output, shape index: {}]  }
   0x1   :  { %244 = vmatprep.subr.bf16.mxu0 %v272_v0  ;;  %v28_v1 = vld [vmem:[%s344_s1] sm:$0x3]  ;;  %246 = vmatprep.mubr.msk.bf16.mxu0 %vm273_vm1, %v272_v0  ;;  %v268_v4 = vld [vmem:[%s346_s3 + $0x8] sm:$0xff]   ;;  %vm109_vm3 = vcmask 261120  }
   0x2   :  { %v42_v2 = vsel %vm40_vm0, %v28_v1, 0  ;;  %250 = vmatprep.subr.bf16.mxu1 %v272_v0  ;;  %254 = vmatprep.mubr.msk.bf16.mxu1 %vm273_vm1, %v272_v0  ;;  %v27_v3 = vld [vmem:[%s345_s0] sm:$0xf]  ;;  %v270_v6 = vld [vmem:[%s347_s5 + $0x8] sm:$0xff]  }
   0x3   :  { %245 = vmatpush3.bf16.msra.mxu0 %v42_v2  ;;  %251 = vmatpush3.bf16.msra.mxu1 %v268_v4  ;;  %v269_v5 = vld [vmem:[%s346_s3] sm:$0xff]  }
   0x4   :  { %258 = vmatprep.subr.bf16.mxu0 %v272_v0  ;;  %252 = vmatprep.subr.bf16.mxu1 %v272_v0  ;;  %v226_v7 = vld [vmem:[%s348_s2] ss:$0 sm:$0xff] }
   0x5   :  { %v271_v15 = vld [vmem:[%s347_s5] sm:$0xff]  }
   0x6   :  { %247 = vmatmul.mubr.msk.bf16.vlgmr.msra.gmra.mxu0 %vm36_vm2, %v27_v3  ;;  %v228_v16 = vld [vmem:[%s349_s4] ss:$0 sm:$0xff] }
   0x7   :  { %262 = vmatprep.mubr.msk.bf16.mxu0 %vm273_vm1, %v272_v0  ;;  %253 = vmatpush3.bf16.msra.mxu1 %v269_v5  ;;  %v232_v24 = vld [vmem:[%s350_s6] ss:$0 sm:$0xff] }
   0x8   :  { %259 = vmatpush3.bf16.msra.mxu0 %v270_v6 }
   0x9   :  { %260 = vmatprep.subr.bf16.mxu0 %v272_v0 }
   0xc   :  { %261 = vmatpush3.bf16.msra.mxu0 %v271_v15 }
  0xc6   :  { %v78_v8 = vpop.f32.mrf.mxu0 }
  0xc7   :  { %v79_v9 = vadd.f32 %v226_v7, %v78_v8 }
  0xc8   :  { %v248_v10 = vpop.f32.mrf.mxu0 }
  0xc9   :  { %v84_v11 = vmax.f32 %v79_v9, 0.0 }
  0xca   :  { %v81_v12 = vpop.f32.mrf.mxu0 }
  0xcb   :  { %v85_v13 = vpack.c.bf16 %v84_v11, %v84_v11 }
  0xcc   :  { %v249_v14 = vpop.f32.mrf.mxu0 }
  0xcd   :  { %255 = vmatmul.mubr.msk.bf16.vlgmr.msra.gmra.mxu1 %vm109_vm3, %v85_v13 }
 0x18d   :  { %v147_v17 = vpop.f32.mrf.mxu1 }
 0x18e   :  { %v148_v18 = vadd.f32 %v228_v16, %v147_v17 }
 0x18f   :  { %v256_v19 = vpop.f32.mrf.mxu1 }
 0x190   :  { %v153_v20 = vmax.f32 %v148_v18, 0.0 }
 0x191   :  { %v150_v21 = vpop.f32.mrf.mxu1 }
 0x192   :  { %v154_v22 = vpack.c.bf16 %v153_v20, %v153_v20 }
 0x193   :  { %v257_v23 = vpop.f32.mrf.mxu1 }
 0x194   :  { %263 = vmatmul.mubr.msk.bf16.vlgmr.msra.gmra.mxu0 %vm109_vm3, %v154_v22 }
 0x254   :  { %v215_v25 = vpop.f32.mrf.mxu0 }
 0x255   :  { %v216_v26 = vadd.f32 %v232_v24, %v215_v25 }
 0x256   :  { %v264_v27 = vpop.f32.mrf.mxu0 }
 0x257   :  { %221 = vst [vmem:[%s351_s7] sm:$0xff] %v216_v26 }
 0x258   :  { %v218_v28 = vpop.f32.mrf.mxu0 }
 0x25a   :  { %v265_v29 = vpop.f32.mrf.mxu0 }

</bundles_post_ra>
